<compile_context>
chip_gen: v7x
topology: tpu7x:2x2x1
jax: 0.10.0
libtpu: 0.0.40
codegen_flags: <defaults>
</compile_context>

<pallas_src>
import jax
import jax.numpy as jnp
from jax import lax
from jax.experimental import pallas as pl
from jax.experimental.pallas import tpu as pltpu

_LANES = 128
_SENTINEL = -1e4  # 0.5*tanh(0.5*_SENTINEL)+0.5 == 0.0 exactly in f32 (and bf16)


def _round_up(a, b):
    return ((a + b - 1) // b) * b


def _make_dice_kernel(tile_r, inner, n_valid_rows, may_be_ragged):
    """Kernel over grid (slices, inner); accumulates (8,128) partials in-place."""

    def kernel(pr_ref, gt_ref, tp_ref, den_ref):
        s = pl.program_id(0)
        k = pl.program_id(1)
        t = s * inner + k  # logical tile index along the row axis

        @pl.when(k == 0)
        def _():
            tp_ref[...] = jnp.zeros_like(tp_ref)
            den_ref[...] = jnp.zeros_like(den_ref)

        x = pr_ref[...].astype(jnp.float32)
        y = gt_ref[...].astype(jnp.float32)

        # sigmoid(x) = 0.5 * tanh(0.5 * x) + 0.5  (single EUP transcendental)
        p = 0.5 * jnp.tanh(0.5 * x) + 0.5

        def accumulate(yv, pv):
            # Tree-reduce the full tile to one (8,128) vreg per stream (pure
            # VALU adds, sublane-aligned reshape => no relayout), then a single
            # tiny RMW on the VMEM-resident output block.
            tp_ref[...] += jnp.sum((yv * pv).reshape(-1, 8, _LANES), axis=0)
            den_ref[...] += jnp.sum((yv + pv).reshape(-1, 8, _LANES), axis=0)

        if not may_be_ragged:
            # All tiles are fully valid: lean hot path, no masking code at all.
            accumulate(y, p)
        else:
            tile_is_full = (t + 1) * tile_r <= n_valid_rows

            @pl.when(tile_is_full)
            def _():
                accumulate(y, p)

            @pl.when(jnp.logical_not(tile_is_full))
            def _():
                # Boundary tile: rows >= n_valid_rows are out-of-bounds garbage
                # (or a clamped duplicate block) -> zero their contribution.
                row = (
                    lax.broadcasted_iota(jnp.int32, (tile_r, _LANES), 0)
                    + t * tile_r
                )
                valid = row < n_valid_rows
                zero = jnp.zeros_like(y)
                accumulate(jnp.where(valid, y, zero), jnp.where(valid, p, zero))

    return kernel


def dice_loss(y_pr, y_gt, eps=1e-7, max_tile_rows=8192):
    """JAX/Pallas equivalent of DiceLoss.forward (activation='sigmoid', beta=1)."""
    assert y_pr.shape == y_gt.shape
    n = int(y_pr.size)

    pr_flat = jnp.ravel(y_pr)
    gt_flat = jnp.ravel(y_gt)

    # Pad only to a multiple of 8 rows x 128 lanes (1024 elements).  For the
    # common power-of-two NCHW sizes this is a no-op (zero extra HBM passes).
    n_padded = _round_up(max(n, 8 * _LANES), 8 * _LANES)
    pad = n_padded - n
    if pad:
        pr_flat = jnp.pad(pr_flat, (0, pad), constant_values=_SENTINEL)
        gt_flat = jnp.pad(gt_flat, (0, pad), constant_values=0)

    n_rows = n_padded // _LANES                 # multiple of 8
    tile_r = min(max_tile_rows, n_rows)         # multiple of 8, or full dim
    num_tiles = pl.cdiv(n_rows, tile_r)
    slices = 2 if num_tiles >= 2 else 1         # leading "parallel" axis
    inner = pl.cdiv(num_tiles, slices)

    pr2 = pr_flat.reshape(n_rows, _LANES)
    gt2 = gt_flat.reshape(n_rows, _LANES)

    # Raggedness only at the grid level (last partial block / duplicated block
    # when slices*inner over-covers num_tiles); data itself is sentinel-padded.
    may_be_ragged = (num_tiles * tile_r != n_rows) or (slices * inner != num_tiles)

    def in_map(s, k):
        # Clamp so over-covering grid steps never issue a fully OOB DMA; the
        # kernel's row mask zeroes their (duplicate) contribution.
        return (jnp.minimum(s * inner + k, num_tiles - 1), 0)

    kernel = _make_dice_kernel(tile_r, inner, n_rows, may_be_ragged)

    bytes_accessed = (
        pr2.size * pr2.dtype.itemsize
        + gt2.size * gt2.dtype.itemsize
        + 2 * slices * 8 * _LANES * 4
    )

    tp_part, den_part = pl.pallas_call(
        kernel,
        out_shape=(
            jax.ShapeDtypeStruct((slices * 8, _LANES), jnp.float32),
            jax.ShapeDtypeStruct((slices * 8, _LANES), jnp.float32),
        ),
        grid_spec=pltpu.PrefetchScalarGridSpec(
            num_scalar_prefetch=0,
            grid=(slices, inner),
            in_specs=[
                pl.BlockSpec((tile_r, _LANES), in_map),
                pl.BlockSpec((tile_r, _LANES), in_map),
            ],
            out_specs=[
                pl.BlockSpec((8, _LANES), lambda s, k: (s, 0)),
                pl.BlockSpec((8, _LANES), lambda s, k: (s, 0)),
            ],
        ),
        compiler_params=pltpu.CompilerParams(
            dimension_semantics=("parallel", "arbitrary"),
            vmem_limit_bytes=32 * 1024 * 1024,
        ),
        cost_estimate=pl.CostEstimate(
            flops=6 * n_padded,
            transcendentals=n_padded,
            bytes_accessed=int(bytes_accessed),
        ),
    )(pr2, gt2)

    tp = jnp.sum(tp_part)
    den = jnp.sum(den_part)
    # beta=1, threshold=None:
    #   fp = sum(pr) - tp, fn = sum(gt) - tp
    #   score = (2*tp + eps) / (2*tp + fn + fp + eps) = (2*tp + eps) / (den + eps)
    score = (2.0 * tp + eps) / (den + eps)
    return 1.0 - score


def _reference_dice_loss(y_pr, y_gt, eps=1e-7):
    p = jax.nn.sigmoid(y_pr.astype(jnp.float32))
    g = y_gt.astype(jnp.float32)
    tp = jnp.sum(g * p)
    fp = jnp.sum(p) - tp
    fn = jnp.sum(g) - tp
    score = (2.0 * tp + eps) / (2.0 * tp + fn + fp + eps)
    return 1.0 - score


if __name__ == "__main__":
    key = jax.random.PRNGKey(0)
    k1, k2, k3, k4 = jax.random.split(key, 4)

    # NCHW logits / binary masks; n = 2048 -> zero-copy fast path (no padding).
    shape = (2, 4, 16, 16)
    y_pr = jax.random.normal(k1, shape, dtype=jnp.float32)
    y_gt = (jax.random.uniform(k2, shape) > 0.5).astype(jnp.float32)
    loss = jax.block_until_ready(dice_loss(y_pr, y_gt))
    ref = jax.block_until_ready(_reference_dice_loss(y_pr, y_gt))
    assert jnp.allclose(loss, ref, rtol=1e-5, atol=1e-5), (loss, ref)

    # Ragged size + bf16 mask + small tiles: sentinel pad, masked boundary tile,
    # 2-slice parallel split.
    shape2 = (2, 3, 50, 50)
    y_pr2 = jax.random.normal(k3, shape2, dtype=jnp.float32)
    y_gt2 = (jax.random.uniform(k4, shape2) > 0.5).astype(jnp.bfloat16)
    loss2 = jax.block_until_ready(dice_loss(y_pr2, y_gt2, max_tile_rows=64))
    ref2 = jax.block_until_ready(_reference_dice_loss(y_pr2, y_gt2))
    assert jnp.allclose(loss2, ref2, rtol=1e-5, atol=1e-5), (loss2, ref2)

    # Odd tile count: exercises the clamped duplicate block on the parallel split.
    loss3 = jax.block_until_ready(dice_loss(y_pr2, y_gt2, max_tile_rows=48))
    assert jnp.allclose(loss3, ref2, rtol=1e-5, atol=1e-5), (loss3, ref2)

    print("KERNEL_OK")
</pallas_src>

<mosaic_0001>
module attributes {stable_mosaic.version = 11 : i64} {
  func.func @kernel(%arg0: i32, %arg1: i32, %arg2: memref<16x128xf32, #tpu.memory_space<vmem>>, %arg3: memref<16x128xf32, #tpu.memory_space<vmem>>, %arg4: memref<8x128xf32, #tpu.memory_space<vmem>>, %arg5: memref<8x128xf32, #tpu.memory_space<vmem>>) attributes {dimension_semantics = [#tpu.dimension_semantics<parallel>, #tpu.dimension_semantics<arbitrary>], iteration_bounds = array<i64: 1, 1>, scalar_prefetch = 0 : i64, scratch_operands = 0 : i64, tpu.core_type = #tpu.core_type<tc>, window_params = [{transform_indices = @transform_0, window_bounds = array<i64: 16, 128>}, {transform_indices = @transform_1, window_bounds = array<i64: 16, 128>}, {transform_indices = @transform_2, window_bounds = array<i64: 8, 128>}, {transform_indices = @transform_3, window_bounds = array<i64: 8, 128>}]} {
    %c0_i32 = arith.constant 0 : i32
    %0 = arith.cmpi eq, %arg1, %c0_i32 : i32
    %1 = arith.extui %0 : i1 to i32
    %c0_i32_0 = arith.constant 0 : i32
    %2 = arith.cmpi ne, %1, %c0_i32_0 : i32
    scf.if %2 {
      %cst_16 = arith.constant 0.000000e+00 : f32
      %24 = vector.broadcast %cst_16 : f32 to vector<8x128xf32>
      %c0_17 = arith.constant 0 : index
      %c0_18 = arith.constant 0 : index
      %25 = vector.load %arg4[%c0_17, %c0_18] : memref<8x128xf32, #tpu.memory_space<vmem>>, vector<8x128xf32>
      tpu.vector_store %arg4[%c0_17, %c0_18], %24 {strides = array<i32>} : memref<8x128xf32, #tpu.memory_space<vmem>>, vector<8x128xf32>,
      %cst_19 = arith.constant 0.000000e+00 : f32
      %26 = vector.broadcast %cst_19 : f32 to vector<8x128xf32>
      %c0_20 = arith.constant 0 : index
      %c0_21 = arith.constant 0 : index
      %27 = vector.load %arg5[%c0_20, %c0_21] : memref<8x128xf32, #tpu.memory_space<vmem>>, vector<8x128xf32>
      tpu.vector_store %arg5[%c0_20, %c0_21], %26 {strides = array<i32>} : memref<8x128xf32, #tpu.memory_space<vmem>>, vector<8x128xf32>,
    } else {
    }
    %c0 = arith.constant 0 : index
    %c0_1 = arith.constant 0 : index
    %3 = vector.load %arg2[%c0, %c0_1] : memref<16x128xf32, #tpu.memory_space<vmem>>, vector<16x128xf32>
    %c0_2 = arith.constant 0 : index
    %c0_3 = arith.constant 0 : index
    %4 = vector.load %arg3[%c0_2, %c0_3] : memref<16x128xf32, #tpu.memory_space<vmem>>, vector<16x128xf32>
    %cst = arith.constant 5.000000e-01 : f32
    %5 = vector.broadcast %cst : f32 to vector<16x128xf32>
    %6 = arith.mulf %5, %3 : vector<16x128xf32>
    %7 = math.tanh %6 : vector<16x128xf32>
    %cst_4 = arith.constant 5.000000e-01 : f32
    %8 = vector.broadcast %cst_4 : f32 to vector<16x128xf32>
    %9 = arith.mulf %8, %7 : vector<16x128xf32>
    %cst_5 = arith.constant 5.000000e-01 : f32
    %10 = vector.broadcast %cst_5 : f32 to vector<16x128xf32>
    %11 = arith.addf %9, %10 : vector<16x128xf32>
    %c0_6 = arith.constant 0 : index
    %c0_7 = arith.constant 0 : index
    %12 = vector.load %arg4[%c0_6, %c0_7] : memref<8x128xf32, #tpu.memory_space<vmem>>, vector<8x128xf32>
    %13 = arith.mulf %4, %11 : vector<16x128xf32>
    %14 = vector.shape_cast %13 : vector<16x128xf32> to vector<2x8x128xf32>
    %cst_8 = arith.constant dense<0.000000e+00> : vector<8x128xf32>
    %15 = vector.multi_reduction <add>, %14, %cst_8 [0] : vector<2x8x128xf32> to vector<8x128xf32>
    %16 = arith.addf %12, %15 : vector<8x128xf32>
    %c0_9 = arith.constant 0 : index
    %c0_10 = arith.constant 0 : index
    %17 = vector.load %arg4[%c0_9, %c0_10] : memref<8x128xf32, #tpu.memory_space<vmem>>, vector<8x128xf32>
    tpu.vector_store %arg4[%c0_9, %c0_10], %16 {strides = array<i32>} : memref<8x128xf32, #tpu.memory_space<vmem>>, vector<8x128xf32>,
    %c0_11 = arith.constant 0 : index
    %c0_12 = arith.constant 0 : index
    %18 = vector.load %arg5[%c0_11, %c0_12] : memref<8x128xf32, #tpu.memory_space<vmem>>, vector<8x128xf32>
    %19 = arith.addf %4, %11 : vector<16x128xf32>
    %20 = vector.shape_cast %19 : vector<16x128xf32> to vector<2x8x128xf32>
    %cst_13 = arith.constant dense<0.000000e+00> : vector<8x128xf32>
    %21 = vector.multi_reduction <add>, %20, %cst_13 [0] : vector<2x8x128xf32> to vector<8x128xf32>
    %22 = arith.addf %18, %21 : vector<8x128xf32>
    %c0_14 = arith.constant 0 : index
    %c0_15 = arith.constant 0 : index
    %23 = vector.load %arg5[%c0_14, %c0_15] : memref<8x128xf32, #tpu.memory_space<vmem>>, vector<8x128xf32>
    tpu.vector_store %arg5[%c0_14, %c0_15], %22 {strides = array<i32>} : memref<8x128xf32, #tpu.memory_space<vmem>>, vector<8x128xf32>,
    return
  }
  func.func @transform_0(%arg0: i32, %arg1: i32) -> (i32, i32) {
    %c1_i32 = arith.constant 1 : i32
    %0 = arith.muli %arg0, %c1_i32 : i32
    %1 = arith.addi %0, %arg1 : i32
    %c0_i32 = arith.constant 0 : i32
    %2 = arith.minsi %1, %c0_i32 : i32
    %c0_i32_0 = arith.constant 0 : i32
    %c0_i32_1 = arith.constant 0 : i32
    return %2, %c0_i32_0 : i32, i32
  }
  func.func @transform_1(%arg0: i32, %arg1: i32) -> (i32, i32) {
    %c1_i32 = arith.constant 1 : i32
    %0 = arith.muli %arg0, %c1_i32 : i32
    %1 = arith.addi %0, %arg1 : i32
    %c0_i32 = arith.constant 0 : i32
    %2 = arith.minsi %1, %c0_i32 : i32
    %c0_i32_0 = arith.constant 0 : i32
    %c0_i32_1 = arith.constant 0 : i32
    return %2, %c0_i32_0 : i32, i32
  }
  func.func @transform_2(%arg0: i32, %arg1: i32) -> (i32, i32) {
    %c0_i32 = arith.constant 0 : i32
    %c0_i32_0 = arith.constant 0 : i32
    return %arg0, %c0_i32 : i32, i32
  }
  func.func @transform_3(%arg0: i32, %arg1: i32) -> (i32, i32) {
    %c0_i32 = arith.constant 0 : i32
    %c0_i32_0 = arith.constant 0 : i32
    return %arg0, %c0_i32 : i32, i32
  }
}

</mosaic_0001>

<bundles_post_ra>
// kernel: tpu_custom_call.1
= control target key start
LH: loop header
LB: loop body
LE: loop exit
PB: predicated region body
PF: predicated region fallthrough
CT: control target
= control target key end

     0   :  { %9 = vsyncpa [#allocation3], 0  ;;  %s308_s0 = inlined_call_operand.hbm [shape: f32[16,128], index: 0, kind: input, shape index: {}]   ;;  %s309_s1 = inlined_call_operand.hbm [shape: f32[16,128], index: 1, kind: input, shape index: {}]   ;;  %s310_s2 = inlined_call_operand.hbm [shape: f32[8,128], index: 2, kind: output, shape index: {0}]   ;;  %s311_s3 = inlined_call_operand.hbm [shape: f32[8,128], index: 3, kind: output, shape index: {1}]  }
   0x1   :  { %10 = vsyncpa [#allocation6], 0 }
   0x2   :  { %11 = vsyncpa [#allocation4], 0 }
   0x3   :  { %12 = vsyncpa [#allocation9], 0  ;;  %s234_s12 = smov [#allocation2]   ;;  %s138_s16 = scalar_lea.hbm %s308_s0, 256 }
   0x4   :  { %s24_s13 = sshll.u32 %s234_s12, 4  ;;  %p139_p0 = scmp.ne.s32.totalorder %s308_s0, %s138_s16  ;;  %s25_s13 = int_to_ptr.vmem [resolvable:$true] %s24_s13 }
   0x5   :  { %p142_p1 = scmp.lt.u32.totalorder %s138_s16, %s308_s0 }
   0x7   :  { %p144_p2 = pnand %p142_p1, %p139_p0 }
   0x9   :  { %147 = shalt.err (!%p144_p2)
}
   0xa   :  { %s148_s21 = scalar_lea.vmem %s25_s13, 256  ;;  %p153_p4 = scmp.lt.s32.totalorder %s25_s13, %s25_s13 }
   0xb   :  { %p149_p3 = scmp.ne.s32.totalorder %s25_s13, %s148_s21  ;;  %p154_p5 = scmp.lt.s32.totalorder %s148_s21, %s148_s21 }
   0xd   :  { %p155_p6 = por %p154_p5, %p153_p4 }
   0xf   :  { %p156_p7 = pnand %p155_p6, %p149_p3 }
  0x11   :  { %159 = shalt.err (!%p156_p7)
}
  0x12   :  { %s235_s22 = smov 128   ;;  %s236_s23 = smov 8  }
  0x13   :  { %30 = dma.hbm_to_vmem [thread:$0]  %s308_s0, 256, %s25_s13, [#allocation3], %s235_s22, %s235_s22, %s236_s23  }
  0x14   :  { %s237_s26 = smov [#allocation5]   ;;  %s160_s30 = scalar_lea.hbm %s309_s1, 256 }
  0x15   :  { %s42_s27 = sshll.u32 %s237_s26, 4  ;;  %p161_p8 = scmp.ne.s32.totalorder %s309_s1, %s160_s30  ;;  %s43_s27 = int_to_ptr.vmem [resolvable:$true] %s42_s27 }
  0x16   :  { %p164_p9 = scmp.lt.u32.totalorder %s160_s30, %s309_s1 }
  0x18   :  { %p166_p10 = pnand %p164_p9, %p161_p8 }
  0x1a   :  { %169 = shalt.err (!%p166_p10)
}
  0x1b   :  { %s170_s8 = scalar_lea.vmem %s43_s27, 256  ;;  %p175_p12 = scmp.lt.s32.totalorder %s43_s27, %s43_s27 }
  0x1c   :  { %p171_p11 = scmp.ne.s32.totalorder %s43_s27, %s170_s8  ;;  %p176_p13 = scmp.lt.s32.totalorder %s170_s8, %s170_s8 }
  0x1e   :  { %p177_p0 = por %p176_p13, %p175_p12 }
  0x20   :  { %p178_p1 = pnand %p177_p0, %p171_p11 }
  0x22   :  { %181 = shalt.err (!%p178_p1)
}
  0x23   :  { %48 = dma.hbm_to_vmem [thread:$0]  %s309_s1, 256, %s43_s27, [#allocation6], %s235_s22, %s235_s22, %s236_s23  }
  0x24   :  { %226 = dma.done.wait [#allocation3], 256  }
  0x25   :  { %227 = vsyncadd [#allocation3], 4294967040 }
  0x26   :  { %228 = dma.done.wait [#allocation6], 256  }
  0x27   :  { %229 = vsyncadd [#allocation6], 4294967040  ;;  %v69_v0 = vld [vmem:[#allocation2] sm:$0xff]  ;;  %v70_v1 = vld [vmem:[#allocation2 + $0x8] sm:$0xff]  ;;  %s238_s1 = smov [#allocation7]   ;;  %s239_s11 = smov [#allocation8]  }
  0x28   :  { %v73_v2 = vmul.f32 0.5, %v69_v0  ;;  %v74_v3 = vmul.f32 0.5, %v70_v1  ;;  %v71_v7 = vld [vmem:[#allocation5] sm:$0xff]  ;;  %v72_v9 = vld [vmem:[#allocation5 + $0x8] sm:$0xff]  ;;  %s99_s10 = sshll.u32 %s238_s1, 4  ;;  %s109_s12 = sshll.u32 %s239_s11, 4  ;;  %s100_s10 = int_to_ptr.vmem [resolvable:$true] %s99_s10  ;;  %s110_s12 = int_to_ptr.vmem [resolvable:$true] %s109_s12 }
  0x29   :  { %s182_s13 = scalar_lea.vmem %s100_s10, 128  ;;  %p187_p3 = scmp.lt.s32.totalorder %s100_s10, %s100_s10 }
  0x2a   :  { %134 = vtanh.f32 %v73_v2  ;;  %p183_p2 = scmp.ne.s32.totalorder %s100_s10, %s182_s13  ;;  %p188_p4 = scmp.lt.s32.totalorder %s182_s13, %s182_s13 }
  0x2b   :  { %136 = vtanh.f32 %v74_v3 }
  0x2c   :  { %p189_p5 = por %p188_p4, %p187_p3 }
  0x2e   :  { %p190_p6 = pnand %p189_p5, %p183_p2 }
  0x34   :  { %v135_v4 = vpop.eup %134 }
  0x35   :  { %v137_v5 = vpop.eup %136  ;;  %v77_v6 = vmul.f32 0.5, %v135_v4 }
  0x36   :  { %v78_v8 = vmul.f32 0.5, %v137_v5 }
  0x37   :  { %v79_v10 = vadd.f32 0.5, %v77_v6 }
  0x38   :  { %v80_v11 = vadd.f32 0.5, %v78_v8 }
  0x39   :  { %v82_v12 = vmul.f32 %v79_v10, %v71_v7  ;;  %v88_v13 = vadd.f32 %v79_v10, %v71_v7 }
  0x3a   :  { %v83_v14 = vmul.f32 %v80_v11, %v72_v9  ;;  %v89_v15 = vadd.f32 %v80_v11, %v72_v9 }
  0x3c   :  { %v84_v16 = vadd.f32 %v83_v14, %v82_v12  ;;  %v90_v17 = vadd.f32 %v89_v15, %v88_v13 }
  0x3e   :  { %86 = vst [vmem:[#allocation7] sm:$0xff] %v84_v16  ;;  %92 = vst [vmem:[#allocation8] sm:$0xff] %v90_v17 }
  0x3f   :  { %193 = shalt.err (!%p190_p6)
}
  0x40   :  { %s194_s16 = scalar_lea.hbm %s310_s2, 128 }
  0x41   :  { %p195_p7 = scmp.ne.s32.totalorder %s310_s2, %s194_s16  ;;  %p198_p8 = scmp.lt.u32.totalorder %s194_s16, %s310_s2 }
  0x43   :  { %p200_p9 = pnand %p198_p8, %p195_p7 }
  0x45   :  { %203 = shalt.err (!%p200_p9)
}
  0x46   :  { %102 = dma.vmem_to_hbm [thread:$0]  %s100_s10, 128, %s310_s2, [#allocation4]  }
  0x47   :  { %s204_s23 = scalar_lea.vmem %s110_s12, 128  ;;  %p209_p11 = scmp.lt.s32.totalorder %s110_s12, %s110_s12 }
  0x48   :  { %p205_p10 = scmp.ne.s32.totalorder %s110_s12, %s204_s23  ;;  %p210_p12 = scmp.lt.s32.totalorder %s204_s23, %s204_s23 }
  0x4a   :  { %p211_p13 = por %p210_p12, %p209_p11 }
  0x4c   :  { %p212_p0 = pnand %p211_p13, %p205_p10 }
  0x4e   :  { %215 = shalt.err (!%p212_p0)
}
  0x4f   :  { %s216_s26 = scalar_lea.hbm %s311_s3, 128 }
  0x50   :  { %p217_p1 = scmp.ne.s32.totalorder %s311_s3, %s216_s26  ;;  %p220_p2 = scmp.lt.u32.totalorder %s216_s26, %s311_s3 }
  0x52   :  { %p222_p3 = pnand %p220_p2, %p217_p1 }
  0x54   :  { %225 = shalt.err (!%p222_p3)
}
  0x55   :  { %112 = dma.vmem_to_hbm [thread:$0]  %s110_s12, 128, %s311_s3, [#allocation9]  }
  0x56   :  { %230 = dma.done.wait [#allocation4], 128  }
  0x57   :  { %231 = vsyncadd [#allocation4], 4294967168 }
  0x58   :  { %232 = dma.done.wait [#allocation9], 128  }
  0x59   :  { %233 = vsyncadd [#allocation9], 4294967168 }
  0x5a   :  { %119 = vsyncpa [#allocation3], 1 }
  0x5b   :  { %120 = vsyncpa [#allocation6], 1 }
  0x5c   :  { %121 = vsyncpa [#allocation4], 1 }
  0x5d   :  { %122 = vsyncpa [#allocation9], 1 }

</bundles_post_ra>
